<compile_context>
chip_gen: v6e
topology: v6e:2x2x1
jax: 0.10.0
libtpu: 0.0.40
codegen_flags: <defaults>
</compile_context>

<pallas_src>
import jax
import jax.numpy as jnp
from jax.experimental import pallas as pl
from jax.experimental.pallas import tpu as pltpu

# ---------------- configuration (End2End(..., max_wh=640, n_classes=80)) ------
N_CLASSES = 80
MAX_WH = 640.0          # ONNX_ORT.max_wh
MAX_OBJ = 100           # kept for fidelity with the module signature

B, C_IN, H, W = 2, 8, 16, 16
N_BOXES = H * W                     # 256 predictions per image (multiple of 128)
C_OUT = 5 + N_CLASSES               # 85
C_PAD = 88                          # detect-head rows padded to a multiple of 8


# ---------------- fused kernel: detect head + ONNX_ORT hot path ---------------
def fused_end2end_kernel(x_ref, w_ref, b_ref, m8_ref, out_ref, y_ref):
    """x: (B, C_IN, N)  w: (88, C_IN)  b: (88, 1)  m8: (8, 5)
    out: (10, B*N) rows = [boxes xyxy (4) | nmsbox (4) | max_score | category]
    y  : (88, N) VMEM scratch holding the detect-head logits.

    Detect-head row layout (set up once in prepare_params):
      rows 0..79 : class logits, rows 80..83 : box xywh, row 84 : objectness,
      rows 85..87: zero padding.
    """
    n_batch = x_ref.shape[0]
    n_box = x_ref.shape[2]

    for b in range(n_batch):                      # static unroll, B = 2
        # --- detect head: one MXU matmul + bias, into VMEM scratch -----------
        y_ref[...] = (
            jnp.dot(w_ref[...], x_ref[b], preferred_element_type=jnp.float32)
            + b_ref[...])

        # --- class max / first-occurrence argmax on pre-sigmoid logits -------
        # sigmoid is monotone and sigmoid(obj) > 0 is constant per box, so
        # argmax(sigmoid(cls)*sigmoid(obj)) == argmax(cls) and
        # max_score == sigmoid(max(cls)) * sigmoid(obj).
        cls = y_ref[0:N_CLASSES, :]                                   # (80, N)
        max_logit = jnp.max(cls, axis=0, keepdims=True)               # (1, N)
        ids = jax.lax.broadcasted_iota(jnp.int32, cls.shape, 0)
        cat = jnp.min(jnp.where(cls >= max_logit, ids, N_CLASSES),
                      axis=0, keepdims=True)                          # (1, N)
        cat_f = cat.astype(jnp.float32)

        # --- sigmoid on only 6 rows ------------------------------------------
        xywh = jax.nn.sigmoid(y_ref[N_CLASSES:N_CLASSES + 4, :])      # (4, N)
        obj = jax.nn.sigmoid(y_ref[N_CLASSES + 4:N_CLASSES + 5, :])   # (1, N)
        max_score = jax.nn.sigmoid(max_logit) * obj                   # (1, N)
        dis = cat_f * MAX_WH                                          # (1, N)

        # --- boxes (xyxy) and nmsbox together as one (8, N) block ------------
        # blk[j]   = sum_i cm[i, j] * xywh[i]            (j = 0..3, boxes)
        # blk[4+j] = sum_i cm[i, j] * xywh[i] + dis       (nmsbox)
        rows = (xywh[0:1, :], xywh[1:2, :], xywh[2:3, :], xywh[3:4, :], dis)
        blk = m8_ref[:, 0:1] * rows[0]
        for i in range(1, 5):
            blk = blk + m8_ref[:, i:i + 1] * rows[i]                  # (8, N)

        lo, hi = b * n_box, (b + 1) * n_box
        out_ref[0:8, lo:hi] = blk                 # one aligned 8-sublane store
        out_ref[8:9, lo:hi] = max_score           # row 8: max score
        out_ref[9:10, lo:hi] = cat_f              # row 9: category id (float)


# ---------------- one-time parameter preparation -------------------------------
def prepare_params(params):
    """Fold the weight/bias permutation + padding and the convert-matrix
    stacking into one-time prep (not on the per-call path)."""
    w_t = params["w"].T                                    # (85, C_IN)
    b_t = params["b"].T                                    # (85, 1)
    # permute to [80 class logits | x y w h | obj], pad to 88 rows with zeros
    zpad_w = jnp.zeros((C_PAD - C_OUT, w_t.shape[1]), w_t.dtype)
    zpad_b = jnp.zeros((C_PAD - C_OUT, 1), b_t.dtype)
    w_p = jnp.concatenate([w_t[5:], w_t[0:4], w_t[4:5], zpad_w], axis=0)
    b_p = jnp.concatenate([b_t[5:], b_t[0:4], b_t[4:5], zpad_b], axis=0)

    # (8, 5) coefficient block: rows 0..3 boxes, rows 4..7 nmsbox (= boxes+dis)
    cm_t = params["cm"].T                                  # (4, 4)
    zeros4 = jnp.zeros((4, 1), jnp.float32)
    ones4 = jnp.ones((4, 1), jnp.float32)
    m8 = jnp.concatenate(
        [jnp.concatenate([cm_t, zeros4], axis=1),
         jnp.concatenate([cm_t, ones4], axis=1)], axis=0)  # (8, 5)
    return {"w": w_p, "b": b_p, "m8": m8}


# ---------------- fused hot path ------------------------------------------------
def end2end_pallas(x_nchw, prepared):
    """Fused detect head + ONNX_ORT post-processing.  Returns the packed
    (10, B*N) lane-dense slab (boxes | nmsbox | max_score | category)."""
    Bn, C, Hh, Ww = x_nchw.shape
    Nb = Hh * Ww
    BN = Bn * Nb

    # Free reshape (NCHW is contiguous): (B, C, H*W); lane axis = 256 boxes.
    x_r = x_nchw.reshape(Bn, C, Nb)

    return pl.pallas_call(
        fused_end2end_kernel,
        out_shape=jax.ShapeDtypeStruct((10, BN), jnp.float32),
        in_specs=[
            pl.BlockSpec(memory_space=pltpu.MemorySpace.VMEM),  # x  (B, C, N)
            pl.BlockSpec(memory_space=pltpu.MemorySpace.VMEM),  # w  (88, C)
            pl.BlockSpec(memory_space=pltpu.MemorySpace.VMEM),  # b  (88, 1)
            pl.BlockSpec(memory_space=pltpu.MemorySpace.VMEM),  # m8 (8, 5)
        ],
        out_specs=pl.BlockSpec(memory_space=pltpu.MemorySpace.VMEM),
        scratch_shapes=[pltpu.VMEM((C_PAD, Nb), jnp.float32)],  # logits scratch
    )(x_r, prepared["w"], prepared["b"], prepared["m8"])


# ---------------- full End2End forward ----------------------------------------
def end2end_forward(x_nchw, prepared):
    Bn = x_nchw.shape[0]
    Nb = x_nchw.shape[2] * x_nchw.shape[3]
    slab = end2end_pallas(x_nchw, prepared)                 # (10, B*N)

    # TODO(synk): ORT_NMS.forward is a random-placeholder export stub
    # (torch.randint-based selection); it has no deterministic Pallas
    # equivalent, so a fixed index set of identical structure is used instead.
    num_det = 16
    X = jnp.sort(jnp.arange(num_det, dtype=jnp.int32) % Bn)
    Y = 100 + jnp.arange(num_det, dtype=jnp.int32)

    # Gather detections directly from the slab with flat lane indices.
    flat = X * Nb + Y                                       # (num_det,)
    cols = slab[:, flat]                                    # (10, num_det)
    selected_boxes = cols[0:4].T                            # (num_det, 4)
    selected_categories = cols[9:10].T                      # (num_det, 1)
    selected_scores = cols[8:9].T                           # (num_det, 1)
    Xf = X.astype(jnp.float32)[:, None]
    return jnp.concatenate(
        [Xf, selected_boxes, selected_categories, selected_scores], axis=1)


# ---------------- test-only helpers --------------------------------------------
def unpack_slab(slab, Bn, Nb):
    boxes = jnp.transpose(slab[0:4].reshape(4, Bn, Nb), (1, 2, 0))     # (B,N,4)
    nmsbox = jnp.transpose(slab[4:8].reshape(4, Bn, Nb), (1, 2, 0))    # (B,N,4)
    max_score = slab[8].reshape(Bn, Nb)[..., None]                     # (B,N,1)
    cat = slab[9].reshape(Bn, Nb)[..., None]                           # (B,N,1)
    return boxes, nmsbox, max_score, cat


def reference_postprocess(x_nchw, params):
    """Pure-JAX reference of the detect head + ONNX_ORT hot path."""
    Bn, C, Hh, Ww = x_nchw.shape
    x_flat = jnp.transpose(x_nchw, (0, 2, 3, 1)).reshape(-1, C)
    pred = jax.nn.sigmoid(x_flat @ params["w"] + params["b"])
    pred = pred.reshape(Bn, Hh * Ww, -1)
    boxes = pred[:, :, :4]
    conf = pred[:, :, 4:5]
    scores = pred[:, :, 5:] * conf
    boxes = boxes @ params["cm"]
    max_score = jnp.max(scores, axis=-1, keepdims=True)
    cat = jnp.argmax(scores, axis=-1)[..., None].astype(jnp.float32)
    nmsbox = boxes + cat * MAX_WH
    return boxes, nmsbox, max_score, cat, scores


if __name__ == "__main__":
    key = jax.random.PRNGKey(0)
    kx, kw, kb = jax.random.split(key, 3)

    x = jax.random.normal(kx, (B, C_IN, H, W), dtype=jnp.float32)   # NCHW input
    params = {
        "w": 0.1 * jax.random.normal(kw, (C_IN, C_OUT), dtype=jnp.float32),
        "b": 0.1 * jax.random.normal(kb, (1, C_OUT), dtype=jnp.float32),
        # ONNX_ORT.convert_matrix (xywh -> xyxy)
        "cm": jnp.array([[1.0, 0.0, 1.0, 0.0],
                         [0.0, 1.0, 0.0, 1.0],
                         [-0.5, 0.0, 0.5, 0.0],
                         [0.0, -0.5, 0.0, 0.5]], dtype=jnp.float32),
    }
    prepared = prepare_params(params)        # one-time parameter prep

    # correctness of the fused Pallas hot path vs a pure-JAX reference
    slab = end2end_pallas(x, prepared)
    k_boxes, k_nmsbox, k_score, k_cat = unpack_slab(slab, B, H * W)
    r_boxes, r_nmsbox, r_score, r_cat, r_scores = reference_postprocess(x, params)

    assert jnp.allclose(k_boxes, r_boxes, atol=1e-4)
    assert jnp.allclose(k_score, r_score, atol=1e-5)
    # argmax semantics: the kernel's chosen category must attain the max score
    picked = jnp.take_along_axis(r_scores, k_cat.astype(jnp.int32), axis=-1)
    assert jnp.allclose(picked, r_score, atol=1e-5)
    # nmsbox formula: boxes + category * max_wh
    assert jnp.allclose(k_nmsbox, k_boxes + k_cat * MAX_WH, atol=1e-3)

    out = jax.jit(end2end_forward)(x, prepared)     # (num_det, 7)
    jax.block_until_ready(out)
    print("KERNEL_OK")
</pallas_src>

<mosaic_0001>
module attributes {stable_mosaic.version = 11 : i64} {
  func.func @fused_end2end_kernel(%arg0: memref<2x8x256xf32, #tpu.memory_space<vmem>>, %arg1: memref<88x8xf32, #tpu.memory_space<vmem>>, %arg2: memref<88x1xf32, #tpu.memory_space<vmem>>, %arg3: memref<8x5xf32, #tpu.memory_space<vmem>>, %arg4: memref<10x512xf32, #tpu.memory_space<vmem>>, %arg5: memref<88x256xf32, #tpu.memory_space<vmem>>) attributes {dimension_semantics = [], scalar_prefetch = 0 : i64, scratch_operands = 1 : i64, tpu.core_type = #tpu.core_type<tc>} {
    %c0 = arith.constant 0 : index
    %c0_0 = arith.constant 0 : index
    %0 = vector.load %arg1[%c0, %c0_0] : memref<88x8xf32, #tpu.memory_space<vmem>>, vector<88x8xf32>
    %c0_1 = arith.constant 0 : index
    %c0_2 = arith.constant 0 : index
    %c0_3 = arith.constant 0 : index
    %1 = vector.load %arg0[%c0_1, %c0_2, %c0_3] : memref<2x8x256xf32, #tpu.memory_space<vmem>>, vector<1x8x256xf32>
    %2 = vector.shape_cast %1 : vector<1x8x256xf32> to vector<8x256xf32>
    %cst = arith.constant dense<0.000000e+00> : vector<88x256xf32>
    %3 = tpu.matmul %0, %2, %cst {dimension_numbers = #tpu.dot_dimension_numbers<[1], [0], [0], [1], [0, 0, 1, 1], [], []>} : vector<88x8xf32>, vector<8x256xf32>, vector<88x256xf32> -> vector<88x256xf32>
    %c0_4 = arith.constant 0 : index
    %c0_5 = arith.constant 0 : index
    %4 = vector.load %arg2[%c0_4, %c0_5] : memref<88x1xf32, #tpu.memory_space<vmem>>, vector<88x1xf32>
    %5 = vector.broadcast %4 : vector<88x1xf32> to vector<88x256xf32>
    %6 = arith.addf %3, %5 : vector<88x256xf32>
    %c0_6 = arith.constant 0 : index
    %c0_7 = arith.constant 0 : index
    %7 = vector.load %arg5[%c0_6, %c0_7] : memref<88x256xf32, #tpu.memory_space<vmem>>, vector<88x256xf32>
    tpu.vector_store %arg5[%c0_6, %c0_7], %6 {strides = array<i32>} : memref<88x256xf32, #tpu.memory_space<vmem>>, vector<88x256xf32>,
    %c0_8 = arith.constant 0 : index
    %c0_9 = arith.constant 0 : index
    %8 = vector.load %arg5[%c0_8, %c0_9] : memref<88x256xf32, #tpu.memory_space<vmem>>, vector<80x256xf32>
    %cst_10 = arith.constant dense<0xFF800000> : vector<256xf32>
    %9 = vector.multi_reduction <maximumf>, %8, %cst_10 [0] : vector<80x256xf32> to vector<256xf32>
    %10 = vector.shape_cast %9 : vector<256xf32> to vector<1x256xf32>
    %11 = tpu.iota {dimensions = array<i32: 0>} : vector<80x256xi32>
    %12 = vector.broadcast %10 : vector<1x256xf32> to vector<80x256xf32>
    %13 = arith.cmpf oge, %8, %12 : vector<80x256xf32>
    %c80_i32 = arith.constant 80 : i32
    %14 = vector.broadcast %c80_i32 : i32 to vector<80x256xi32>
    %15 = arith.select %13, %11, %14 : vector<80x256xi1>, vector<80x256xi32>
    %cst_11 = arith.constant dense<2147483647> : vector<256xi32>
    %16 = vector.multi_reduction <minsi>, %15, %cst_11 [0] : vector<80x256xi32> to vector<256xi32>
    %17 = vector.shape_cast %16 : vector<256xi32> to vector<1x256xi32>
    %18 = arith.sitofp %17 : vector<1x256xi32> to vector<1x256xf32>
    %c80 = arith.constant 80 : index
    %c0_12 = arith.constant 0 : index
    %19 = vector.load %arg5[%c80, %c0_12] : memref<88x256xf32, #tpu.memory_space<vmem>>, vector<4x256xf32>
    %20 = arith.negf %19 : vector<4x256xf32>
    %21 = math.exp %20 : vector<4x256xf32>
    %cst_13 = arith.constant 1.000000e+00 : f32
    %22 = vector.broadcast %cst_13 : f32 to vector<4x256xf32>
    %23 = arith.addf %22, %21 : vector<4x256xf32>
    %24 = arith.divf %22, %23 : vector<4x256xf32>
    %c84 = arith.constant 84 : index
    %c0_14 = arith.constant 0 : index
    %25 = vector.load %arg5[%c84, %c0_14] : memref<88x256xf32, #tpu.memory_space<vmem>>, vector<1x256xf32>
    %26 = arith.negf %25 : vector<1x256xf32>
    %27 = math.exp %26 : vector<1x256xf32>
    %cst_15 = arith.constant 1.000000e+00 : f32
    %28 = vector.broadcast %cst_15 : f32 to vector<1x256xf32>
    %29 = arith.addf %28, %27 : vector<1x256xf32>
    %30 = arith.divf %28, %29 : vector<1x256xf32>
    %31 = arith.negf %10 : vector<1x256xf32>
    %32 = math.exp %31 : vector<1x256xf32>
    %cst_16 = arith.constant 1.000000e+00 : f32
    %33 = vector.broadcast %cst_16 : f32 to vector<1x256xf32>
    %34 = arith.addf %33, %32 : vector<1x256xf32>
    %35 = arith.divf %33, %34 : vector<1x256xf32>
    %36 = arith.mulf %35, %30 : vector<1x256xf32>
    %cst_17 = arith.constant 6.400000e+02 : f32
    %37 = vector.broadcast %cst_17 : f32 to vector<1x256xf32>
    %38 = arith.mulf %18, %37 : vector<1x256xf32>
    %39 = vector.extract_strided_slice %24 {offsets = [0, 0], sizes = [1, 256], strides = [1, 1]} : vector<4x256xf32> to vector<1x256xf32>
    %40 = vector.extract_strided_slice %24 {offsets = [1, 0], sizes = [1, 256], strides = [1, 1]} : vector<4x256xf32> to vector<1x256xf32>
    %41 = vector.extract_strided_slice %24 {offsets = [2, 0], sizes = [1, 256], strides = [1, 1]} : vector<4x256xf32> to vector<1x256xf32>
    %42 = vector.extract_strided_slice %24 {offsets = [3, 0], sizes = [1, 256], strides = [1, 1]} : vector<4x256xf32> to vector<1x256xf32>
    %c0_18 = arith.constant 0 : index
    %c0_19 = arith.constant 0 : index
    %43 = vector.load %arg3[%c0_18, %c0_19] : memref<8x5xf32, #tpu.memory_space<vmem>>, vector<8x1xf32>
    %44 = vector.broadcast %43 : vector<8x1xf32> to vector<8x256xf32>
    %45 = vector.broadcast %39 : vector<1x256xf32> to vector<8x256xf32>
    %46 = arith.mulf %44, %45 : vector<8x256xf32>
    %c0_20 = arith.constant 0 : index
    %c1 = arith.constant 1 : index
    %47 = vector.load %arg3[%c0_20, %c1] : memref<8x5xf32, #tpu.memory_space<vmem>>, vector<8x1xf32>
    %48 = vector.broadcast %47 : vector<8x1xf32> to vector<8x256xf32>
    %49 = vector.broadcast %40 : vector<1x256xf32> to vector<8x256xf32>
    %50 = arith.mulf %48, %49 : vector<8x256xf32>
    %51 = arith.addf %46, %50 : vector<8x256xf32>
    %c0_21 = arith.constant 0 : index
    %c2 = arith.constant 2 : index
    %52 = vector.load %arg3[%c0_21, %c2] : memref<8x5xf32, #tpu.memory_space<vmem>>, vector<8x1xf32>
    %53 = vector.broadcast %52 : vector<8x1xf32> to vector<8x256xf32>
    %54 = vector.broadcast %41 : vector<1x256xf32> to vector<8x256xf32>
    %55 = arith.mulf %53, %54 : vector<8x256xf32>
    %56 = arith.addf %51, %55 : vector<8x256xf32>
    %c0_22 = arith.constant 0 : index
    %c3 = arith.constant 3 : index
    %57 = vector.load %arg3[%c0_22, %c3] : memref<8x5xf32, #tpu.memory_space<vmem>>, vector<8x1xf32>
    %58 = vector.broadcast %57 : vector<8x1xf32> to vector<8x256xf32>
    %59 = vector.broadcast %42 : vector<1x256xf32> to vector<8x256xf32>
    %60 = arith.mulf %58, %59 : vector<8x256xf32>
    %61 = arith.addf %56, %60 : vector<8x256xf32>
    %c0_23 = arith.constant 0 : index
    %c4 = arith.constant 4 : index
    %62 = vector.load %arg3[%c0_23, %c4] : memref<8x5xf32, #tpu.memory_space<vmem>>, vector<8x1xf32>
    %63 = vector.broadcast %62 : vector<8x1xf32> to vector<8x256xf32>
    %64 = vector.broadcast %38 : vector<1x256xf32> to vector<8x256xf32>
    %65 = arith.mulf %63, %64 : vector<8x256xf32>
    %66 = arith.addf %61, %65 : vector<8x256xf32>
    %c0_24 = arith.constant 0 : index
    %c0_25 = arith.constant 0 : index
    %67 = vector.load %arg4[%c0_24, %c0_25] : memref<10x512xf32, #tpu.memory_space<vmem>>, vector<8x256xf32>
    tpu.vector_store %arg4[%c0_24, %c0_25], %66 {strides = array<i32>} : memref<10x512xf32, #tpu.memory_space<vmem>>, vector<8x256xf32>,
    %c8 = arith.constant 8 : index
    %c0_26 = arith.constant 0 : index
    %68 = vector.load %arg4[%c8, %c0_26] : memref<10x512xf32, #tpu.memory_space<vmem>>, vector<1x256xf32>
    tpu.vector_store %arg4[%c8, %c0_26], %36 {strides = array<i32>} : memref<10x512xf32, #tpu.memory_space<vmem>>, vector<1x256xf32>,
    %c9 = arith.constant 9 : index
    %c0_27 = arith.constant 0 : index
    %69 = vector.load %arg4[%c9, %c0_27] : memref<10x512xf32, #tpu.memory_space<vmem>>, vector<1x256xf32>
    tpu.vector_store %arg4[%c9, %c0_27], %18 {strides = array<i32>} : memref<10x512xf32, #tpu.memory_space<vmem>>, vector<1x256xf32>,
    %c0_28 = arith.constant 0 : index
    %c0_29 = arith.constant 0 : index
    %70 = vector.load %arg1[%c0_28, %c0_29] : memref<88x8xf32, #tpu.memory_space<vmem>>, vector<88x8xf32>
    %c1_30 = arith.constant 1 : index
    %c0_31 = arith.constant 0 : index
    %c0_32 = arith.constant 0 : index
    %71 = vector.load %arg0[%c1_30, %c0_31, %c0_32] : memref<2x8x256xf32, #tpu.memory_space<vmem>>, vector<1x8x256xf32>
    %72 = vector.shape_cast %71 : vector<1x8x256xf32> to vector<8x256xf32>
    %cst_33 = arith.constant dense<0.000000e+00> : vector<88x256xf32>
    %73 = tpu.matmul %70, %72, %cst_33 {dimension_numbers = #tpu.dot_dimension_numbers<[1], [0], [0], [1], [0, 0, 1, 1], [], []>} : vector<88x8xf32>, vector<8x256xf32>, vector<88x256xf32> -> vector<88x256xf32>
    %c0_34 = arith.constant 0 : index
    %c0_35 = arith.constant 0 : index
    %74 = vector.load %arg2[%c0_34, %c0_35] : memref<88x1xf32, #tpu.memory_space<vmem>>, vector<88x1xf32>
    %75 = vector.broadcast %74 : vector<88x1xf32> to vector<88x256xf32>
    %76 = arith.addf %73, %75 : vector<88x256xf32>
    %c0_36 = arith.constant 0 : index
    %c0_37 = arith.constant 0 : index
    %77 = vector.load %arg5[%c0_36, %c0_37] : memref<88x256xf32, #tpu.memory_space<vmem>>, vector<88x256xf32>
    tpu.vector_store %arg5[%c0_36, %c0_37], %76 {strides = array<i32>} : memref<88x256xf32, #tpu.memory_space<vmem>>, vector<88x256xf32>,
    %c0_38 = arith.constant 0 : index
    %c0_39 = arith.constant 0 : index
    %78 = vector.load %arg5[%c0_38, %c0_39] : memref<88x256xf32, #tpu.memory_space<vmem>>, vector<80x256xf32>
    %cst_40 = arith.constant dense<0xFF800000> : vector<256xf32>
    %79 = vector.multi_reduction <maximumf>, %78, %cst_40 [0] : vector<80x256xf32> to vector<256xf32>
    %80 = vector.shape_cast %79 : vector<256xf32> to vector<1x256xf32>
    %81 = tpu.iota {dimensions = array<i32: 0>} : vector<80x256xi32>
    %82 = vector.broadcast %80 : vector<1x256xf32> to vector<80x256xf32>
    %83 = arith.cmpf oge, %78, %82 : vector<80x256xf32>
    %c80_i32_41 = arith.constant 80 : i32
    %84 = vector.broadcast %c80_i32_41 : i32 to vector<80x256xi32>
    %85 = arith.select %83, %81, %84 : vector<80x256xi1>, vector<80x256xi32>
    %cst_42 = arith.constant dense<2147483647> : vector<256xi32>
    %86 = vector.multi_reduction <minsi>, %85, %cst_42 [0] : vector<80x256xi32> to vector<256xi32>
    %87 = vector.shape_cast %86 : vector<256xi32> to vector<1x256xi32>
    %88 = arith.sitofp %87 : vector<1x256xi32> to vector<1x256xf32>
    %c80_43 = arith.constant 80 : index
    %c0_44 = arith.constant 0 : index
    %89 = vector.load %arg5[%c80_43, %c0_44] : memref<88x256xf32, #tpu.memory_space<vmem>>, vector<4x256xf32>
    %90 = arith.negf %89 : vector<4x256xf32>
    %91 = math.exp %90 : vector<4x256xf32>
    %cst_45 = arith.constant 1.000000e+00 : f32
    %92 = vector.broadcast %cst_45 : f32 to vector<4x256xf32>
    %93 = arith.addf %92, %91 : vector<4x256xf32>
    %94 = arith.divf %92, %93 : vector<4x256xf32>
    %c84_46 = arith.constant 84 : index
    %c0_47 = arith.constant 0 : index
    %95 = vector.load %arg5[%c84_46, %c0_47] : memref<88x256xf32, #tpu.memory_space<vmem>>, vector<1x256xf32>
    %96 = arith.negf %95 : vector<1x256xf32>
    %97 = math.exp %96 : vector<1x256xf32>
    %cst_48 = arith.constant 1.000000e+00 : f32
    %98 = vector.broadcast %cst_48 : f32 to vector<1x256xf32>
    %99 = arith.addf %98, %97 : vector<1x256xf32>
    %100 = arith.divf %98, %99 : vector<1x256xf32>
    %101 = arith.negf %80 : vector<1x256xf32>
    %102 = math.exp %101 : vector<1x256xf32>
    %cst_49 = arith.constant 1.000000e+00 : f32
    %103 = vector.broadcast %cst_49 : f32 to vector<1x256xf32>
    %104 = arith.addf %103, %102 : vector<1x256xf32>
    %105 = arith.divf %103, %104 : vector<1x256xf32>
    %106 = arith.mulf %105, %100 : vector<1x256xf32>
    %cst_50 = arith.constant 6.400000e+02 : f32
    %107 = vector.broadcast %cst_50 : f32 to vector<1x256xf32>
    %108 = arith.mulf %88, %107 : vector<1x256xf32>
    %109 = vector.extract_strided_slice %94 {offsets = [0, 0], sizes = [1, 256], strides = [1, 1]} : vector<4x256xf32> to vector<1x256xf32>
    %110 = vector.extract_strided_slice %94 {offsets = [1, 0], sizes = [1, 256], strides = [1, 1]} : vector<4x256xf32> to vector<1x256xf32>
    %111 = vector.extract_strided_slice %94 {offsets = [2, 0], sizes = [1, 256], strides = [1, 1]} : vector<4x256xf32> to vector<1x256xf32>
    %112 = vector.extract_strided_slice %94 {offsets = [3, 0], sizes = [1, 256], strides = [1, 1]} : vector<4x256xf32> to vector<1x256xf32>
    %c0_51 = arith.constant 0 : index
    %c0_52 = arith.constant 0 : index
    %113 = vector.load %arg3[%c0_51, %c0_52] : memref<8x5xf32, #tpu.memory_space<vmem>>, vector<8x1xf32>
    %114 = vector.broadcast %113 : vector<8x1xf32> to vector<8x256xf32>
    %115 = vector.broadcast %109 : vector<1x256xf32> to vector<8x256xf32>
    %116 = arith.mulf %114, %115 : vector<8x256xf32>
    %c0_53 = arith.constant 0 : index
    %c1_54 = arith.constant 1 : index
    %117 = vector.load %arg3[%c0_53, %c1_54] : memref<8x5xf32, #tpu.memory_space<vmem>>, vector<8x1xf32>
    %118 = vector.broadcast %117 : vector<8x1xf32> to vector<8x256xf32>
    %119 = vector.broadcast %110 : vector<1x256xf32> to vector<8x256xf32>
    %120 = arith.mulf %118, %119 : vector<8x256xf32>
    %121 = arith.addf %116, %120 : vector<8x256xf32>
    %c0_55 = arith.constant 0 : index
    %c2_56 = arith.constant 2 : index
    %122 = vector.load %arg3[%c0_55, %c2_56] : memref<8x5xf32, #tpu.memory_space<vmem>>, vector<8x1xf32>
    %123 = vector.broadcast %122 : vector<8x1xf32> to vector<8x256xf32>
    %124 = vector.broadcast %111 : vector<1x256xf32> to vector<8x256xf32>
    %125 = arith.mulf %123, %124 : vector<8x256xf32>
    %126 = arith.addf %121, %125 : vector<8x256xf32>
    %c0_57 = arith.constant 0 : index
    %c3_58 = arith.constant 3 : index
    %127 = vector.load %arg3[%c0_57, %c3_58] : memref<8x5xf32, #tpu.memory_space<vmem>>, vector<8x1xf32>
    %128 = vector.broadcast %127 : vector<8x1xf32> to vector<8x256xf32>
    %129 = vector.broadcast %112 : vector<1x256xf32> to vector<8x256xf32>
    %130 = arith.mulf %128, %129 : vector<8x256xf32>
    %131 = arith.addf %126, %130 : vector<8x256xf32>
    %c0_59 = arith.constant 0 : index
    %c4_60 = arith.constant 4 : index
    %132 = vector.load %arg3[%c0_59, %c4_60] : memref<8x5xf32, #tpu.memory_space<vmem>>, vector<8x1xf32>
    %133 = vector.broadcast %132 : vector<8x1xf32> to vector<8x256xf32>
    %134 = vector.broadcast %108 : vector<1x256xf32> to vector<8x256xf32>
    %135 = arith.mulf %133, %134 : vector<8x256xf32>
    %136 = arith.addf %131, %135 : vector<8x256xf32>
    %c0_61 = arith.constant 0 : index
    %c256 = arith.constant 256 : index
    %137 = vector.load %arg4[%c0_61, %c256] : memref<10x512xf32, #tpu.memory_space<vmem>>, vector<8x256xf32>
    tpu.vector_store %arg4[%c0_61, %c256], %136 {strides = array<i32>} : memref<10x512xf32, #tpu.memory_space<vmem>>, vector<8x256xf32>,
    %c8_62 = arith.constant 8 : index
    %c256_63 = arith.constant 256 : index
    %138 = vector.load %arg4[%c8_62, %c256_63] : memref<10x512xf32, #tpu.memory_space<vmem>>, vector<1x256xf32>
    tpu.vector_store %arg4[%c8_62, %c256_63], %106 {strides = array<i32>} : memref<10x512xf32, #tpu.memory_space<vmem>>, vector<1x256xf32>,
    %c9_64 = arith.constant 9 : index
    %c256_65 = arith.constant 256 : index
    %139 = vector.load %arg4[%c9_64, %c256_65] : memref<10x512xf32, #tpu.memory_space<vmem>>, vector<1x256xf32>
    tpu.vector_store %arg4[%c9_64, %c256_65], %88 {strides = array<i32>} : memref<10x512xf32, #tpu.memory_space<vmem>>, vector<1x256xf32>,
    return
  }
}

</mosaic_0001>

<bundles_post_ra>
// kernel: tpu_custom_call.1
= control target key start
LH: loop header
LB: loop body
LE: loop exit
PB: predicated region body
PF: predicated region fallthrough
CT: control target
= control target key end

     0   :  { %vm97_vm0 = vcmask 64512   ;;  %v1317_v5 = vmov 0.0   ;;  %v1318_v9 = vmov 0   ;;  %s1977_s0 = inlined_call_operand.vmem [shape: f32[2,8,256], index: 0, kind: input, shape index: {}]   ;;  %s1978_s1 = inlined_call_operand.vmem [shape: f32[88,8], index: 1, kind: input, shape index: {}]   ;;  %s1979_s2 = inlined_call_operand.vmem [shape: f32[88,1], index: 2, kind: input, shape index: {}]   ;;  %s1980_s3 = inlined_call_operand.vmem [shape: f32[8,5], index: 3, kind: input, shape index: {}]   ;;  %s1981_s4 = inlined_call_operand.hbm [shape: f32[10,512], index: 4, kind: output, shape index: {}]  }
   0x1   :  { %v30_v0 = vld [vmem:[%s1977_s0 + $0x8] sm:$0xff]  ;;  %v1219_v1 = vld [vmem:[%s1977_s0 + $0x18] sm:$0xff]  ;;  %v29_v2 = vld [vmem:[%s1977_s0] sm:$0xff]  ;;  %195 = vmatprep.mubr.f32.mxu0 %v1317_v5  ;;  %787 = vmatprep.mubr.f32.mxu1 %v1317_v5 }
   0x2   :  { %161 = vmatprep.subr.mxu0 %v30_v0  ;;  %753 = vmatprep.subr.mxu1 %v1219_v1  ;;  %v1218_v3 = vld [vmem:[%s1977_s0 + $0x10] sm:$0xff]  ;;  %v18_v4 = vld [vmem:[%s1978_s1] sm:$0xff]  ;;  %v19_v7 = vld [vmem:[%s1978_s1 + $0x8] sm:$0xff] }
   0x3   :  { %162 = vmatpush1.msra.mxu0 %v29_v2  ;;  %754 = vmatpush1.msra.mxu1 %v1218_v3  ;;  %v31_v6 = vld [vmem:[%s1979_s2] sm:$0xff]  ;;  %v33_v8 = vld [vmem:[%s1979_s2 + $0x10] sm:$0xff]  ;;  %v32_v10 = vld [vmem:[%s1979_s2 + $0x8] sm:$0xff] }
   0x4   :  { %1202 = vmatmul.mubr.msk.f32.vlgmr.msra.gmra.mxu0 %vm97_vm0, %v18_v4  ;;  %1220 = vmatmul.mubr.msk.f32.vlgmr.msra.gmra.mxu1 %vm97_vm0, %v18_v4  ;;  %v34_v11 = vld [vmem:[%s1979_s2 + $0x18] sm:$0xff]  ;;  %v20_v12 = vld [vmem:[%s1978_s1 + $0x10] sm:$0xff] }
   0x5   :  { %201 = vmatprep.mubr.f32.mxu0 %v1317_v5  ;;  %793 = vmatprep.mubr.f32.mxu1 %v1317_v5 }
   0x6   :  { %1246 = vset.pattern.permute.xlu0 %v1318_v9  ;;  %1247 = vset.pattern.permute.xlu1 %v1318_v9 }
   0x7   :  { %44 = vperm.xlu0 %1246, %v31_v6   ;;  %54 = vperm.xlu1 %1247, %v33_v8  }
   0x8   :  { %1203 = vmatmul.mubr.msk.f32.gmra.mxu0 %vm97_vm0, %v19_v7  ;;  %1221 = vmatmul.mubr.msk.f32.gmra.mxu1 %vm97_vm0, %v19_v7 }
   0x9   :  { %207 = vmatprep.mubr.f32.mxu0 %v1317_v5  ;;  %799 = vmatprep.mubr.f32.mxu1 %v1317_v5 }
   0xa   :  { %9 = vsyncpa [#allocation4], 0  ;;  %v35_v13 = vld [vmem:[%s1979_s2 + $0x20] sm:$0xff]  ;;  %v36_v14 = vld [vmem:[%s1979_s2 + $0x28] sm:$0xff]  ;;  %v1319_v29 = vmov 1   ;;  %v1320_v30 = vmov 2  }
   0xb   :  { %49 = vperm.xlu0 %1246, %v32_v10   ;;  %59 = vperm.xlu1 %1247, %v34_v11   ;;  %v21_v15 = vld [vmem:[%s1978_s1 + $0x18] sm:$0xff]  ;;  %v37_v16 = vld [vmem:[%s1979_s2 + $0x30] sm:$0xff]  ;;  %v22_v18 = vld [vmem:[%s1978_s1 + $0x20] sm:$0xff]  ;;  %v1321_v31 = vmov 3   ;;  %v1322_v32 = vmov 4  }
   0xc   :  { %1204 = vmatmul.mubr.msk.f32.gmra.mxu0 %vm97_vm0, %v20_v12  ;;  %1222 = vmatmul.mubr.msk.f32.gmra.mxu1 %vm97_vm0, %v20_v12  ;;  %v38_v17 = vld [vmem:[%s1979_s2 + $0x38] sm:$0xff]  ;;  %v39_v19 = vld [vmem:[%s1979_s2 + $0x40] sm:$0xff]  ;;  %v40_v20 = vld [vmem:[%s1979_s2 + $0x48] sm:$0xff] }
   0xd   :  { %213 = vmatprep.mubr.f32.mxu0 %v1317_v5  ;;  %805 = vmatprep.mubr.f32.mxu1 %v1317_v5  ;;  %v23_v21 = vld [vmem:[%s1978_s1 + $0x28] sm:$0xff]  ;;  %v24_v22 = vld [vmem:[%s1978_s1 + $0x30] sm:$0xff]  ;;  %v25_v23 = vld [vmem:[%s1978_s1 + $0x38] sm:$0xff] }
   0xe   :  { %v26_v24 = vld [vmem:[%s1978_s1 + $0x40] sm:$0xff]  ;;  %v27_v25 = vld [vmem:[%s1978_s1 + $0x48] sm:$0xff]  ;;  %v28_v26 = vld [vmem:[%s1978_s1 + $0x50] sm:$0xff]  ;;  %s1324_s1 = smov [#allocation3]  }
   0xf   :  { %64 = vperm.xlu0 %1246, %v35_v13   ;;  %69 = vperm.xlu1 %1247, %v36_v14   ;;  %v41_v27 = vld [vmem:[%s1979_s2 + $0x50] sm:$0xff]  ;;  %v490_v28 = vld [vmem:[%s1980_s3] sm:$0xff]  ;;  %s1191_s2 = sshll.u32 %s1324_s1, 4  ;;  %s1192_s2 = int_to_ptr.vmem [resolvable:$true] %s1191_s2 }
  0x10   :  { %1205 = vmatmul.mubr.msk.f32.gmra.mxu0 %vm97_vm0, %v21_v15  ;;  %1223 = vmatmul.mubr.msk.f32.gmra.mxu1 %vm97_vm0, %v21_v15  ;;  %s1295_s3 = scalar_lea.vmem %s1192_s2, 1024  ;;  %p1300_p1 = scmp.lt.s32.totalorder %s1192_s2, %s1192_s2 }
  0x11   :  { %219 = vmatprep.mubr.f32.mxu0 %v1317_v5  ;;  %811 = vmatprep.mubr.f32.mxu1 %v1317_v5  ;;  %p1296_p0 = scmp.ne.s32.totalorder %s1192_s2, %s1295_s3  ;;  %p1301_p2 = scmp.lt.s32.totalorder %s1295_s3, %s1295_s3 }
  0x13   :  { %74 = vperm.xlu0 %1246, %v37_v16   ;;  %79 = vperm.xlu1 %1247, %v38_v17   ;;  %p1302_p3 = por %p1301_p2, %p1300_p1 }
  0x14   :  { %1206 = vmatmul.mubr.msk.f32.gmra.mxu0 %vm97_vm0, %v22_v18  ;;  %1224 = vmatmul.mubr.msk.f32.gmra.mxu1 %vm97_vm0, %v22_v18 }
  0x15   :  { %225 = vmatprep.mubr.f32.mxu0 %v1317_v5  ;;  %817 = vmatprep.mubr.f32.mxu1 %v1317_v5  ;;  %p1303_p4 = pnand %p1302_p3, %p1296_p0 }
  0x17   :  { %84 = vperm.xlu0 %1246, %v39_v19   ;;  %89 = vperm.xlu1 %1247, %v40_v20  }
  0x18   :  { %1207 = vmatmul.mubr.msk.f32.gmra.mxu0 %vm97_vm0, %v23_v21  ;;  %1225 = vmatmul.mubr.msk.f32.gmra.mxu1 %vm97_vm0, %v23_v21 }
  0x19   :  { %231 = vmatprep.mubr.f32.mxu0 %v1317_v5  ;;  %823 = vmatprep.mubr.f32.mxu1 %v1317_v5 }
  0x1b   :  { %637 = vperm.xlu0 %1246, %v31_v6   ;;  %642 = vperm.xlu1 %1247, %v32_v10  }
  0x1c   :  { %1208 = vmatmul.mubr.msk.f32.gmra.mxu0 %vm97_vm0, %v24_v22  ;;  %1226 = vmatmul.mubr.msk.f32.gmra.mxu1 %vm97_vm0, %v24_v22 }
  0x1d   :  { %237 = vmatprep.mubr.f32.mxu0 %v1317_v5  ;;  %829 = vmatprep.mubr.f32.mxu1 %v1317_v5 }
  0x1f   :  { %647 = vperm.xlu0 %1246, %v33_v8   ;;  %652 = vperm.xlu1 %1247, %v34_v11  }
  0x20   :  { %1209 = vmatmul.mubr.msk.f32.gmra.mxu0 %vm97_vm0, %v25_v23  ;;  %1227 = vmatmul.mubr.msk.f32.gmra.mxu1 %vm97_vm0, %v25_v23 }
  0x21   :  { %835 = vmatprep.mubr.f32.mxu1 %v1317_v5  ;;  %243 = vmatprep.mubr.f32.mxu0 %v1317_v5 }
  0x23   :  { %657 = vperm.xlu0 %1246, %v35_v13   ;;  %662 = vperm.xlu1 %1247, %v36_v14  }
  0x24   :  { %1210 = vmatmul.mubr.msk.f32.gmra.mxu0 %vm97_vm0, %v26_v24  ;;  %1228 = vmatmul.mubr.msk.f32.gmra.mxu1 %vm97_vm0, %v26_v24 }
  0x25   :  { %841 = vmatprep.mubr.f32.mxu1 %v1317_v5  ;;  %249 = vmatprep.mubr.f32.mxu0 %v1317_v5 }
  0x27   :  { %667 = vperm.xlu0 %1246, %v37_v16   ;;  %672 = vperm.xlu1 %1247, %v38_v17  }
  0x28   :  { %1211 = vmatmul.mubr.msk.f32.gmra.mxu0 %vm97_vm0, %v27_v25  ;;  %1229 = vmatmul.mubr.msk.f32.gmra.mxu1 %vm97_vm0, %v27_v25 }
  0x29   :  { %847 = vmatprep.mubr.f32.mxu1 %v1317_v5  ;;  %255 = vmatprep.mubr.f32.mxu0 %v1317_v5 }
  0x2b   :  { %677 = vperm.xlu0 %1246, %v39_v19   ;;  %682 = vperm.xlu1 %1247, %v40_v20  }
  0x2c   :  { %1212 = vmatmul.mubr.msk.f32.gmra.mxu0 %vm97_vm0, %v28_v26  ;;  %1230 = vmatmul.mubr.msk.f32.gmra.mxu1 %vm97_vm0, %v28_v26 }
  0x2f   :  { %94 = vperm.xlu0 %1246, %v41_v27   ;;  %687 = vperm.xlu1 %1247, %v41_v27  }
  0x33   :  { %493 = vperm.xlu0 %1246, %v490_v28   ;;  %1248 = vset.pattern.permute.xlu1 %v1319_v29 }
  0x34   :  { %507 = vperm.xlu1 %1248, %v490_v28  }
  0x37   :  { %1073 = vperm.xlu0 %1246, %v490_v28  }
  0x38   :  { %1087 = vperm.xlu1 %1248, %v490_v28  }
  0x3b   :  { %1249 = vset.pattern.permute.xlu0 %v1320_v30 }
  0x3c   :  { %1250 = vset.pattern.permute.xlu1 %v1320_v30  ;;  %523 = vperm.xlu0 %1249, %v490_v28  }
  0x3d   :  { %1103 = vperm.xlu1 %1250, %v490_v28  }
  0x40   :  { %1252 = vset.pattern.permute.xlu0 %v1321_v31 }
  0x41   :  { %1251 = vset.pattern.permute.xlu1 %v1321_v31  ;;  %1119 = vperm.xlu0 %1252, %v490_v28  }
  0x42   :  { %539 = vperm.xlu1 %1251, %v490_v28  }
  0x45   :  { %1254 = vset.pattern.permute.xlu0 %v1322_v32 }
  0x46   :  { %1253 = vset.pattern.permute.xlu1 %v1322_v32 }
  0x47   :  { %555 = vperm.xlu1 %1253, %v490_v28  }
  0x4b   :  { %1135 = vperm.xlu1 %1253, %v490_v28  }
  0x82   :  { %v1477_v33 = vpop.permute.xlu0 %44  ;;  %v55_v34 = vpop.permute.xlu1 %54 }
  0x86   :  { %v1479_v35 = vpop.permute.xlu0 %49  ;;  %v1481_v36 = vpop.permute.xlu1 %59 }
  0x8a   :  { %v1483_v37 = vpop.permute.xlu0 %64  ;;  %v1485_v38 = vpop.permute.xlu1 %69 }
  0x8e   :  { %v1487_v39 = vpop.permute.xlu0 %74  ;;  %v1489_v40 = vpop.permute.xlu1 %79 }
  0x92   :  { %v1491_v41 = vpop.permute.xlu0 %84  ;;  %v1493_v42 = vpop.permute.xlu1 %89 }
  0x96   :  { %v638_v43 = vpop.permute.xlu0 %637  ;;  %v643_v49 = vpop.permute.xlu1 %642 }
  0x9a   :  { %v648_v56 = vpop.permute.xlu0 %647  ;;  %v653_v63 = vpop.permute.xlu1 %652 }
  0x9e   :  { %v658_v6 = vpop.permute.xlu0 %657  ;;  %v663_v13 = vpop.permute.xlu1 %662 }
  0xa2   :  { %v668_v20 = vpop.permute.xlu0 %667  ;;  %v673_v32 = vpop.permute.xlu1 %672 }
  0xc4   :  { %v197_v44 = vpop.f32.mrf.mxu0  ;;  %v789_v45 = vpop.f32.mrf.mxu1 }
  0xc5   :  { %v1495_v46 = vadd.f32 %v789_v45, %v638_v43 }
  0xc6   :  { %v791_v47 = vpop.f32.mrf.mxu1  ;;  %v199_v48 = vpop.f32.mrf.mxu0 }
  0xc7   :  { %v1497_v50 = vadd.f32 %v791_v47, %v638_v43 }
  0xc8   :  { %v203_v51 = vpop.f32.mrf.mxu0  ;;  %v795_v52 = vpop.f32.mrf.mxu1 }
  0xc9   :  { %v1499_v53 = vadd.f32 %v795_v52, %v643_v49  ;;  %v1543_v52 = vadd.f32 %v197_v44, %v1477_v33 }
  0xca   :  { %v797_v54 = vpop.f32.mrf.mxu1  ;;  %v205_v55 = vpop.f32.mrf.mxu0 }
  0xcb   :  { %v1501_v57 = vadd.f32 %v797_v54, %v643_v49  ;;  %v1549_v54 = vadd.f32 %v203_v51, %v1479_v35 }
  0xcc   :  { %v209_v58 = vpop.f32.mrf.mxu0  ;;  %v801_v59 = vpop.f32.mrf.mxu1 }
  0xcd   :  { %1990 = vst [vmem:[#allocation6_spill] sm:$0xff] %v1501_v57  ;;  %v1503_v60 = vadd.f32 %v801_v59, %v648_v56  ;;  %v1528_v28 = vadd.f32 %v209_v58, %v55_v34 }
  0xce   :  { %v803_v61 = vpop.f32.mrf.mxu1  ;;  %v211_v62 = vpop.f32.mrf.mxu0 }
  0xcf   :  { %1991 = vst [vmem:[#allocation7_spill] sm:$0xff] %v1503_v60  ;;  %v1505_v0 = vadd.f32 %v803_v61, %v648_v56  ;;  %v896_v22 = vmax.f32 %v1495_v46, %v1503_v60  ;;  %v1530_v29 = vadd.f32 %v211_v62, %v55_v34  ;;  %v1546_v34 = vadd.f32 %v199_v48, %v1477_v33 }
  0xd0   :  { %v215_v1 = vpop.f32.mrf.mxu0  ;;  %v807_v2 = vpop.f32.mrf.mxu1 }
  0xd1   :  { %1992 = vst [vmem:[#allocation8_spill] sm:$0xff] %v1505_v0  ;;  %v1507_v3 = vadd.f32 %v807_v2, %v653_v63  ;;  %v911_v27 = vmax.f32 %v1497_v50, %v1505_v0  ;;  %v1533_v43 = vadd.f32 %v215_v1, %v1481_v36  ;;  %v678_v1 = vpop.permute.xlu0 %677  ;;  %v319_v2 = vmax.f32 %v1546_v34, %v1530_v29 }
  0xd2   :  { %v217_v4 = vpop.f32.mrf.mxu0  ;;  %v809_v5 = vpop.f32.mrf.mxu1 }
  0xd3   :  { %1993 = vst [vmem:[#allocation9_spill] sm:$0xff] %v1507_v3  ;;  %v1509_v7 = vadd.f32 %v809_v5, %v653_v63  ;;  %v1552_v59 = vadd.f32 %v217_v4, %v1481_v36  ;;  %v1562_v63 = vadd.f32 %v205_v55, %v1479_v35  ;;  %v304_v36 = vmax.f32 %v1543_v52, %v1528_v28 }
  0xd4   :  { %v221_v8 = vpop.f32.mrf.mxu0  ;;  %v813_v9 = vpop.f32.mrf.mxu1  ;;  %v305_v4 = vmax.f32 %v1549_v54, %v1533_v43 }
  0xd5   :  { %1994 = vst [vmem:[#allocation10_spill] sm:$0xff] %v1509_v7  ;;  %v1511_v10 = vadd.f32 %v813_v9, %v658_v6  ;;  %v1555_v61 = vadd.f32 %v221_v8, %v1483_v37 }
  0xd6   :  { %v223_v11 = vpop.f32.mrf.mxu0  ;;  %v815_v12 = vpop.f32.mrf.mxu1 }
  0xd7   :  { %v1513_v14 = vadd.f32 %v815_v12, %v658_v6  ;;  %v1524_v26 = vmax.f32 %v896_v22, %v1511_v10  ;;  %v1576_v35 = vadd.f32 %v223_v11, %v1483_v37  ;;  %v897_v37 = vmax.f32 %v1499_v53, %v1507_v3 }
  0xd8   :  { %v227_v15 = vpop.f32.mrf.mxu0  ;;  %v819_v16 = vpop.f32.mrf.mxu1 }
  0xd9   :  { %v1515_v17 = vadd.f32 %v819_v16, %v663_v13  ;;  %v1540_v49 = vmax.f32 %v911_v27, %v1513_v14  ;;  %v1565_v33 = vadd.f32 %v227_v15, %v1485_v38  ;;  %v306_v15 = vmax.f32 %v304_v36, %v1555_v61 }
  0xda   :  { %v229_v18 = vpop.f32.mrf.mxu0  ;;  %v821_v19 = vpop.f32.mrf.mxu1  ;;  %v1983_v27 = vlaneseq }
  0xdb   :  { %v1517_v21 = vadd.f32 %v821_v19, %v663_v13  ;;  %v1579_v55 = vadd.f32 %v229_v18, %v1485_v38  ;;  %v320_v13 = vmax.f32 %v1562_v63, %v1552_v59  ;;  %v307_v38 = vmax.f32 %v305_v4, %v1565_v33 }
  0xdc   :  { %v233_v23 = vpop.f32.mrf.mxu0  ;;  %v825_v24 = vpop.f32.mrf.mxu1 }
  0xdd   :  { %v1521_v25 = vadd.f32 %v825_v24, %v668_v20  ;;  %v1582_v6 = vadd.f32 %v233_v23, %v1487_v39  ;;  %v683_v23 = vpop.permute.xlu1 %682 }
  0xde   :  { %v235_v30 = vpop.f32.mrf.mxu0  ;;  %v827_v31 = vpop.f32.mrf.mxu1 }
  0xdf   :  { %v1535_v45 = vadd.f32 %v827_v31, %v668_v20  ;;  %v900_v47 = vmax.f32 %v1524_v26, %v1521_v25  ;;  %v1596_v11 = vadd.f32 %v235_v30, %v1487_v39  ;;  %v899_v31 = vmax.f32 %v897_v37, %v1515_v17 }
  0xe0   :  { %v239_v56 = vpop.f32.mrf.mxu0  ;;  %v831_v58 = vpop.f32.mrf.mxu1  ;;  %v321_v39 = vmax.f32 %v319_v2, %v1576_v35  ;;  %v322_v30 = vmax.f32 %v320_v13, %v1579_v55 }
  0xe1   :  { %v1557_v62 = vadd.f32 %v831_v58, %v673_v32  ;;  %v915_v44 = vmax.f32 %v1540_v49, %v1535_v45  ;;  %v1585_v8 = vadd.f32 %v239_v56, %v1489_v40 }
  0xe2   :  { %v241_v48 = vpop.f32.mrf.mxu0  ;;  %v833_v51 = vpop.f32.mrf.mxu1  ;;  %v323_v2 = vmax.f32 %v321_v39, %v1596_v11 }
  0xe3   :  { %v1573_v5 = vadd.f32 %v833_v51, %v673_v32  ;;  %v1599_v18 = vadd.f32 %v241_v48, %v1489_v40  ;;  %v912_v32 = vmax.f32 %v1501_v57, %v1509_v7  ;;  %v308_v40 = vmax.f32 %v306_v15, %v1582_v6 }
  0xe4   :  { %v245_v9 = vpop.f32.mrf.mxu0  ;;  %v837_v12 = vpop.f32.mrf.mxu1  ;;  %v309_v49 = vmax.f32 %v307_v38, %v1585_v8  ;;  %v901_v36 = vmax.f32 %v899_v31, %v1557_v62 }
  0xe5   :  { %v1590_v16 = vadd.f32 %v837_v12, %v678_v1  ;;  %v1602_v19 = vadd.f32 %v245_v9, %v1491_v41  ;;  %v324_v4 = vmax.f32 %v322_v30, %v1599_v18  ;;  %v914_v15 = vmax.f32 %v912_v32, %v1517_v21 }
  0xe6   :  { %v247_v20 = vpop.f32.mrf.mxu0  ;;  %v839_v22 = vpop.f32.mrf.mxu1 }
  0xe7   :  { %v1604_v24 = vadd.f32 %v839_v22, %v678_v1  ;;  %v1614_v48 = vadd.f32 %v247_v20, %v1491_v41  ;;  %v310_v9 = vmax.f32 %v308_v40, %v1602_v19  ;;  %v95_v22 = vpop.permute.xlu0 %94  ;;  %v902_v39 = vmax.f32 %v900_v47, %v1590_v16 }
  0xe8   :  { %v251_v56 = vpop.f32.mrf.mxu0  ;;  %v843_v58 = vpop.f32.mrf.mxu1  ;;  %v916_v30 = vmax.f32 %v914_v15, %v1573_v5 }
  0xe9   :  { %v1617_v51 = vadd.f32 %v251_v56, %v1493_v42  ;;  %v1619_v1 = vadd.f32 %v843_v58, %v683_v23  ;;  %v325_v32 = vmax.f32 %v323_v2, %v1614_v48  ;;  %v917_v58 = vmax.f32 %v915_v44, %v1604_v24 }
  0xea   :  { %v253_v12 = vpop.f32.mrf.mxu0  ;;  %v845_v13 = vpop.f32.mrf.mxu1 }
  0xeb   :  { %v311_v41 = vmax.f32 %v309_v49, %v1617_v51  ;;  %v1628_v37 = vadd.f32 %v253_v12, %v1493_v42  ;;  %v1630_v38 = vadd.f32 %v845_v13, %v683_v23  ;;  %v903_v20 = vmax.f32 %v901_v36, %v1619_v1 }
  0xec   :  { %v257_v31 = vpop.f32.mrf.mxu0  ;;  %v1643_v13 = vshrl.u32 %v1983_v27, 7  ;;  %v849_v15 = vpop.f32.mrf.mxu1 }
  0xed   :  { %v312_v40 = vmax.f32 %v310_v9, %v311_v41  ;;  %v326_v49 = vmax.f32 %v324_v4, %v1628_v37  ;;  %v258_v42 = vadd.f32 %v257_v31, %v95_v22  ;;  %v904_v23 = vmax.f32 %v902_v39, %v903_v20 }
  0xee   :  { %v259_v56 = vpop.f32.mrf.mxu0  ;;  %v918_v36 = vmax.f32 %v916_v30, %v1630_v38  ;;  %v1646_v44 = vadd.s32 8, %v1643_v13  ;;  %v1649_v30 = vadd.s32 16, %v1643_v13  ;;  %v1671_v57 = vadd.s32 64, %v1643_v13 }
  0xef   :  { %v313_v12 = vrot.slane %v312_v40, 4  ;;  %v327_v26 = vmax.f32 %v325_v32, %v326_v49  ;;  %282 = vst [vmem:[#allocation2 + $0xa0] sm:$0xff] %v258_v42  ;;  %v260_v47 = vadd.f32 %v259_v56, %v95_v22  ;;  %v905_v7 = vrot.slane %v904_v23, 4  ;;  %v851_v22 = vpop.f32.mrf.mxu1  ;;  %v688_v56 = vpop.permute.xlu1 %687 }
  0xf0   :  { %v919_v2 = vmax.f32 %v917_v58, %v918_v36  ;;  %v1652_v32 = vadd.s32 24, %v1643_v13  ;;  %v1655_v58 = vadd.s32 32, %v1643_v13  ;;  %v1661_v36 = vadd.s32 48, %v1643_v13 }
  0xf1   :  { %v314_v9 = vmax.f32 %v312_v40, %v313_v12  ;;  %v328_v41 = vrot.slane %v327_v26, 4  ;;  %283 = vst [vmem:[#allocation2 + $0xa8] sm:$0xff] %v260_v47  ;;  %v906_v4 = vmax.f32 %v904_v23, %v905_v7  ;;  %v1658_v7 = vadd.s32 40, %v1643_v13 }
  0xf2   :  { %v920_v31 = vrot.slane %v919_v2, 4  ;;  %v850_v12 = vadd.f32 %v849_v15, %v688_v56  ;;  %v1674_v15 = vadd.s32 72, %v1643_v13 }
  0xf3   :  { %v315_v20 = vrot.slane %v314_v9, 2  ;;  %v329_v39 = vmax.f32 %v327_v26, %v328_v41  ;;  %v907_v49 = vrot.slane %v906_v4, 2 }
  0xf4   :  { %v921_v42 = vmax.f32 %v919_v2, %v920_v31  ;;  %v852_v31 = vadd.f32 %v851_v22, %v688_v56 }
  0xf5   :  { %v316_v40 = vmax.f32 %v314_v9, %v315_v20  ;;  %v330_v23 = vrot.slane %v329_v39, 2  ;;  %v1663_v47 = vmax.f32 %v906_v4, %v907_v49  ;;  %v1666_v9 = vadd.s32 56, %v1643_v13 }
  0xf6   :  { %v441_v26 = vld [vmem:[#allocation2 + $0xa0] sm:$0xf]  ;;  %v922_v41 = vrot.slane %v921_v42, 2 }
  0xf7   :  { %v317_v27 = vrot.slane %v316_v40, 1  ;;  %v331_v3 = vmax.f32 %v329_v39, %v330_v23  ;;  %v1213_v2 = vmul.f32 -1.442695, %v441_v26  ;;  %v909_v22 = vrot.slane %v1663_v47, 1 }
  0xf8   :  { %v442_v20 = vld [vmem:[#allocation2 + $0xa8] sm:$0xf]  ;;  %v456_v0 = vld [vmem:[#allocation2 + $0xa4] ss:$8 sm:$0x3]  ;;  %v1676_v4 = vmax.f32 %v921_v42, %v922_v41 }
  0xf9   :  { %v1668_v60 = vmax.f32 %v316_v40, %v317_v27  ;;  %874 = vst [vmem:[#allocation2 + $0xa0] sm:$0xff] %v850_v12  ;;  %875 = vst [vmem:[#allocation2 + $0xa8] sm:$0xff] %v852_v31  ;;  %v332_v39 = vrot.slane %v331_v3, 1  ;;  %1255 = vpow2.f32 %v1213_v2  ;;  %v1214_v27 = vmul.f32 -1.442695, %v442_v20 }
  0xfa   :  { %v1215_v49 = vmul.f32 -1.442695, %v456_v0 }
  0xfb   :  { %vm345_vm1 = vcmp.ge.f32.partialorder %v1543_v52, %v1668_v60  ;;  %vm347_vm2 = vcmp.ge.f32.partialorder %v1549_v54, %v1668_v60  ;;  %vm349_vm3 = vcmp.ge.f32.partialorder %v1528_v28, %v1668_v60  ;;  %vm351_vm4 = vcmp.ge.f32.partialorder %v1533_v43, %v1668_v60 }
  0xfc   :  { %vm353_vm5 = vcmp.ge.f32.partialorder %v1555_v61, %v1668_v60  ;;  %vm355_vm6 = vcmp.ge.f32.partialorder %v1565_v33, %v1668_v60  ;;  %vm357_vm7 = vcmp.ge.f32.partialorder %v1582_v6, %v1668_v60  ;;  %v365_v52 = vsel %vm345_vm1, %v1643_v13, 80 }
  0xfd   :  { %v367_v54 = vsel %vm347_vm2, %v1646_v44, 80  ;;  %v924_v28 = vrot.slane %v1676_v4, 1  ;;  %vm359_vm8 = vcmp.ge.f32.partialorder %v1585_v8, %v1668_v60  ;;  %vm361_vm9 = vcmp.ge.f32.partialorder %v1602_v19, %v1668_v60 }
  0xfe   :  { %v369_v43 = vsel %vm349_vm3, %v1649_v30, 80  ;;  %v371_v61 = vsel %vm351_vm4, %v1652_v32, 80  ;;  %vm363_vm10 = vcmp.ge.f32.partialorder %v1617_v51, %v1668_v60  ;;  %v373_v33 = vsel %vm353_vm5, %v1655_v58, 80 }
  0xff   :  { %v375_v6 = vsel %vm355_vm6, %v1658_v7, 80  ;;  %v377_v0 = vsel %vm357_vm7, %v1661_v36, 80  ;;  %vm385_vm11 = vcmp.lt.s32.totalorder %v365_v52, %v369_v43  ;;  %vm387_vm12 = vcmp.lt.s32.totalorder %v367_v54, %v371_v61 }
 0x100   :  { %v1707_v42 = vmax.f32 %v331_v3, %v332_v39  ;;  %1257 = vpow2.f32 %v1214_v27  ;;  %v1022_v8 = vld [vmem:[#allocation2 + $0xa0] sm:$0xf]  ;;  %v379_v19 = vsel %vm359_vm8, %v1666_v9, 80  ;;  %v381_v56 = vsel %vm361_vm9, %v1671_v57, 80  ;;  %v1023_v27 = vld [vmem:[#allocation2 + $0xa8] sm:$0xf] }
 0x101   :  { %v386_v40 = vsel %vm385_vm11, %v365_v52, %v369_v43  ;;  %v388_v23 = vsel %vm387_vm12, %v367_v54, %v371_v61  ;;  %v383_v51 = vsel %vm363_vm10, %v1674_v15, 80  ;;  %1259 = vpow2.f32 %v1215_v49 }
 0x102   :  { %vm389_vm13 = vcmp.lt.s32.totalorder %v386_v40, %v373_v33  ;;  %vm391_vm14 = vcmp.lt.s32.totalorder %v388_v23, %v375_v6  ;;  %vm346_vm15 = vcmp.ge.f32.partialorder %v1546_v34, %v1707_v42  ;;  %v1231_v3 = vmul.f32 -1.442695, %v1022_v8 }
 0x103   :  { %v390_v12 = vsel %vm389_vm13, %v386_v40, %v373_v33  ;;  %v392_v26 = vsel %vm391_vm14, %v388_v23, %v375_v6  ;;  %vm348_vm2 = vcmp.ge.f32.partialorder %v1562_v63, %v1707_v42  ;;  %vm350_vm3 = vcmp.ge.f32.partialorder %v1530_v29, %v1707_v42 }
 0x104   :  { %vm393_vm0 = vcmp.lt.s32.totalorder %v390_v12, %v377_v0  ;;  %vm395_vm1 = vcmp.lt.s32.totalorder %v392_v26, %v379_v19  ;;  %vm352_vm4 = vcmp.ge.f32.partialorder %v1552_v59, %v1707_v42  ;;  %vm354_vm5 = vcmp.ge.f32.partialorder %v1576_v35, %v1707_v42  ;;  %v1752_v35 = vpop.permute.xlu1 %507 }
 0x105   :  { %v394_v41 = vsel %vm393_vm0, %v390_v12, %v377_v0  ;;  %v396_v2 = vsel %vm395_vm1, %v392_v26, %v379_v19  ;;  %vm356_vm8 = vcmp.ge.f32.partialorder %v1579_v55, %v1707_v42  ;;  %vm358_vm9 = vcmp.ge.f32.partialorder %v1596_v11, %v1707_v42 }
 0x106   :  { %vm397_vm6 = vcmp.lt.s32.totalorder %v394_v41, %v381_v56  ;;  %vm399_vm7 = vcmp.lt.s32.totalorder %v396_v2, %v383_v51  ;;  %v1256_v63 = vpop.eup %1255  ;;  %v366_v39 = vsel %vm346_vm15, %v1643_v13, 80  ;;  %v368_v59 = vsel %vm348_vm2, %v1646_v44, 80 }
 0x107   :  { %v398_v31 = vsel %vm397_vm6, %v394_v41, %v381_v56  ;;  %v400_v20 = vsel %vm399_vm7, %v396_v2, %v383_v51  ;;  %vm360_vm10 = vcmp.ge.f32.partialorder %v1599_v18, %v1707_v42  ;;  %vm362_vm11 = vcmp.ge.f32.partialorder %v1614_v48, %v1707_v42  ;;  %v1764_v41 = vpop.permute.xlu0 %493 }
 0x108   :  { %v370_v55 = vsel %vm350_vm3, %v1649_v30, 80  ;;  %v372_v11 = vsel %vm352_vm4, %v1652_v32, 80  ;;  %vm401_vm12 = vcmp.lt.s32.totalorder %v398_v31, %v400_v20  ;;  %vm364_vm13 = vcmp.ge.f32.partialorder %v1628_v37, %v1707_v42 }
 0x109   :  { %v374_v34 = vsel %vm354_vm5, %v1655_v58, 80  ;;  %v376_v52 = vsel %vm356_vm8, %v1658_v7, 80  ;;  %v378_v54 = vsel %vm358_vm9, %v1661_v36, 80  ;;  %vm412_vm14 = vcmp.lt.s32.totalorder %v366_v39, %v370_v55 }
 0x10a   :  { %vm414_vm15 = vcmp.lt.s32.totalorder %v368_v59, %v372_v11  ;;  %v449_v29 = vadd.f32 1.0, %v1256_v63  ;;  %v413_v49 = vsel %vm412_vm14, %v366_v39, %v370_v55  ;;  %1261 = vpow2.f32 %v1231_v3 }
 0x10b   :  { %v415_v43 = vsel %vm414_vm15, %v368_v59, %v372_v11  ;;  %v1232_v61 = vmul.f32 -1.442695, %v1023_v27  ;;  %v380_v33 = vsel %vm360_vm10, %v1666_v9, 80  ;;  %vm416_vm0 = vcmp.lt.s32.totalorder %v413_v49, %v374_v34 }
 0x10c   :  { %vm418_vm1 = vcmp.lt.s32.totalorder %v415_v43, %v376_v52  ;;  %1263 = vrcp.f32 %v449_v29  ;;  %v417_v0 = vsel %vm416_vm0, %v413_v49, %v374_v34  ;;  %v402_v19 = vsel %vm401_vm12, %v398_v31, %v400_v20  ;;  %v1766_v20 = vpop.permute.xlu1 %1087 }
 0x10d   :  { %v1258_v6 = vpop.eup %1257  ;;  %v419_v8 = vsel %vm418_vm1, %v415_v43, %v376_v52  ;;  %1265 = vpow2.f32 %v1232_v61  ;;  %v382_v56 = vsel %vm362_vm11, %v1671_v57, 80  ;;  %vm420_vm2 = vcmp.lt.s32.totalorder %v417_v0, %v378_v54 }
 0x10e   :  { %vm422_vm3 = vcmp.lt.s32.totalorder %v419_v8, %v380_v33  ;;  %v450_v18 = vadd.f32 1.0, %v1258_v6  ;;  %v1260_v40 = vpop.eup %1259  ;;  %v384_v23 = vsel %vm364_vm13, %v1674_v15, 80  ;;  %v421_v51 = vsel %vm420_vm2, %v417_v0, %v378_v54 }
 0x10f   :  { %v423_v12 = vsel %vm422_vm3, %v419_v8, %v380_v33  ;;  %v403_v26 = vrot.slane %v402_v19, 4  ;;  %vm424_vm4 = vcmp.lt.s32.totalorder %v421_v51, %v382_v56  ;;  %v1216_v3 = vmul.f32 -1.442695, %v1668_v60 }
 0x110   :  { %vm426_vm5 = vcmp.lt.s32.totalorder %v423_v12, %v384_v23  ;;  %1267 = vrcp.f32 %v450_v18  ;;  %v425_v48 = vsel %vm424_vm4, %v421_v51, %v382_v56  ;;  %v1323_v63 = vmov 1966171168   ;;  %v1797_v61 = vpop.permute.xlu1 %1103 }
 0x111   :  { %v427_v2 = vsel %vm426_vm5, %v423_v12, %v384_v23  ;;  %v568_v31 = vunpack.c.l.s4 %v1323_v63  ;;  %vm404_vm6 = vcmp.lt.s32.totalorder %v402_v19, %v403_v26  ;;  %1269 = vpow2.f32 %v1216_v3 }
 0x112   :  { %vm428_vm7 = vcmp.lt.s32.totalorder %v425_v48, %v427_v2  ;;  %v405_v37 = vsel %vm404_vm6, %v402_v19, %v403_v26  ;;  %v1217_v39 = vmul.f32 -1.442695, %v1707_v42  ;;  %v1772_v60 = vmax.f32 %v1663_v47, %v909_v22 }
 0x113   :  { %v406_v59 = vrot.slane %v405_v37, 2  ;;  %v429_v55 = vsel %vm428_vm7, %v425_v48, %v427_v2  ;;  %v1777_v11 = vmax.f32 %v1676_v4, %v924_v28  ;;  %v1780_v27 = vsub.s32 0, %v1643_v13  ;;  %v1791_v4 = vpop.permute.xlu0 %1073 }
 0x114   :  { %v430_v34 = vrot.slane %v429_v55, 4  ;;  %1271 = vpow2.f32 %v1217_v39  ;;  %v1783_v52 = vsub.s32 1, %v1643_v13  ;;  %v1786_v42 = vsub.s32 2, %v1643_v13 }
 0x115   :  { %v1789_v54 = vsub.s32 3, %v1643_v13  ;;  %vm407_vm8 = vcmp.lt.s32.totalorder %v405_v37, %v406_v59  ;;  %v460_v47 = vadd.f32 1.0, %v1260_v40  ;;  %v569_v22 = vunpack.c.0.s8 %v568_v31 }
 0x116   :  { %v408_v29 = vsel %vm407_vm8, %v405_v37, %v406_v59  ;;  %vm431_vm9 = vcmp.lt.s32.totalorder %v429_v55, %v430_v34  ;;  %vm934_vm10 = vcmp.ge.f32.partialorder %v1511_v10, %v1772_v60  ;;  %vm935_vm11 = vcmp.ge.f32.partialorder %v1513_v14, %v1777_v11  ;;  %v540_v59 = vpop.permute.xlu1 %539 }
 0x117   :  { %1995 = vst [vmem:[#allocation11_spill] sm:$0xff] %v1789_v54  ;;  %v409_v28 = vrot.slane %v408_v29, 1  ;;  %v432_v49 = vsel %vm431_vm9, %v429_v55, %v430_v34  ;;  %v1262_v43 = vpop.eup %1261  ;;  %vm936_vm12 = vcmp.ge.f32.partialorder %v1515_v17, %v1772_v60  ;;  %vm937_vm13 = vcmp.ge.f32.partialorder %v1517_v21, %v1777_v11  ;;  %v524_v23 = vpop.permute.xlu0 %523 }
 0x118   :  { %v433_v33 = vrot.slane %v432_v49, 2  ;;  %vm938_vm14 = vcmp.ge.f32.partialorder %v1521_v25, %v1772_v60  ;;  %v1030_v0 = vadd.f32 1.0, %v1262_v43  ;;  %vm939_vm0 = vcmp.ge.f32.partialorder %v1535_v45, %v1777_v11 }
 0x119   :  { %v1264_v6 = vpop.eup %1263  ;;  %vm410_vm15 = vcmp.lt.s32.totalorder %v408_v29, %v409_v28  ;;  %vm940_vm1 = vcmp.ge.f32.partialorder %v1557_v62, %v1772_v60  ;;  %1273 = vrcp.f32 %v460_v47  ;;  %v1816_v2 = vsub.s32 %v569_v22, %v1643_v13 }
 0x11a   :  { %v1266_v8 = vpop.eup %1265  ;;  %v499_v19 = vrot.slane %v1264_v6, %v1780_v27  ;;  %v513_v56 = vrot.slane %v1264_v6, %v1783_v52  ;;  %v529_v18 = vrot.slane %v1264_v6, %v1786_v42  ;;  %vm434_vm2 = vcmp.lt.s32.totalorder %v432_v49, %v433_v33 }
 0x11b   :  { %v1031_v40 = vadd.f32 1.0, %v1266_v8  ;;  %1275 = vrcp.f32 %v1030_v0  ;;  %v411_v26 = vsel %vm410_vm15, %v408_v29, %v409_v28  ;;  %v545_v48 = vrot.slane %v1264_v6, %v1789_v54 }
 0x11c   :  { %v504_v51 = vmul.f32 %v499_v19, %v1764_v41  ;;  %v518_v12 = vmul.f32 %v513_v56, %v1752_v35  ;;  %v435_v63 = vsel %vm434_vm2, %v432_v49, %v433_v33  ;;  %v534_v55 = vmul.f32 %v529_v18, %v524_v23 }
 0x11d   :  { %v1268_v3 = vpop.eup %1267  ;;  %1277 = vrcp.f32 %v1031_v40  ;;  %v436_v28 = vrot.slane %v435_v63, 1  ;;  %v439_v43 = vcvt.s32.f32 %v411_v26  ;;  %v550_v8 = vmul.f32 %v545_v48, %v540_v59 }
 0x11e   :  { %v503_v31 = vrot.slane %v1268_v3, %v1780_v27  ;;  %v517_v37 = vrot.slane %v1268_v3, %v1783_v52  ;;  %v520_v39 = vadd.f32 %v518_v12, %v504_v51  ;;  %v1270_v34 = vpop.eup %1269  ;;  %v549_v47 = vrot.slane %v1268_v3, %v1789_v54 }
 0x11f   :  { %v533_v29 = vrot.slane %v1268_v3, %v1786_v42  ;;  %v469_v49 = vadd.f32 1.0, %v1270_v34  ;;  %vm437_vm3 = vcmp.lt.s32.totalorder %v435_v63, %v436_v28  ;;  %v488_v54 = vmul.f32 640.0, %v439_v43 }
 0x120   :  { %v505_v6 = vmul.f32 %v503_v31, %v1764_v41  ;;  %v519_v22 = vmul.f32 %v517_v37, %v1752_v35  ;;  %v536_v0 = vadd.f32 %v534_v55, %v520_v39  ;;  %v551_v19 = vmul.f32 %v549_v47, %v540_v59  ;;  %v1036_v41 = vld [vmem:[#allocation2 + $0xa4] ss:$8 sm:$0x3]  ;;  %v556_v35 = vpop.permute.xlu1 %555 }
 0x121   :  { %v1272_v33 = vpop.eup %1271  ;;  %v535_v56 = vmul.f32 %v533_v29, %v524_v23  ;;  %v438_v18 = vsel %vm437_vm3, %v435_v63, %v436_v28  ;;  %1279 = vrcp.f32 %v469_v49  ;;  %v558_v48 = vmul.f32 %v556_v35, %v488_v54  ;;  %v2002_v49 = vld [vmem:[#allocation9_spill] sm:$0xff] }
 0x122   :  { %v521_v40 = vadd.f32 %v519_v22, %v505_v6  ;;  %v470_v51 = vadd.f32 1.0, %v1272_v33  ;;  %v440_v12 = vcvt.s32.f32 %v438_v18  ;;  %v552_v3 = vadd.f32 %v550_v8, %v536_v0  ;;  %v1999_v22 = vld [vmem:[#allocation6_spill] sm:$0xff]  ;;  %v2000_v0 = vld [vmem:[#allocation7_spill] sm:$0xff] }
 0x123   :  { %v1233_v37 = vmul.f32 -1.442695, %v1036_v41  ;;  %v1996_v29 = vlaneseq  ;;  %vm926_vm15 = vcmp.ge.f32.partialorder %v1495_v46, %v1772_v60  ;;  %vm928_vm2 = vcmp.ge.f32.partialorder %v1499_v53, %v1772_v60  ;;  %v2001_v46 = vld [vmem:[#allocation8_spill] sm:$0xff] }
 0x124   :  { %v537_v26 = vadd.f32 %v535_v56, %v521_v40  ;;  %1281 = vrcp.f32 %v470_v51  ;;  %v489_v23 = vmul.f32 640.0, %v440_v12  ;;  %v591_v63 = vcombine.low %v439_v43, %v440_v12 }
 0x125   :  { %v560_v59 = vadd.f32 %v558_v48, %v552_v3  ;;  %vm1838_vm9 = vcmp.lt.s32.totalorder %v1996_v29, 256  ;;  %vm927_vm3 = vcmp.ge.f32.partialorder %v1497_v50, %v1777_v11  ;;  %vm929_vm8 = vcmp.ge.f32.partialorder %v1999_v22, %v1777_v11  ;;  %v2003_v50 = vld [vmem:[#allocation10_spill] sm:$0xff] }
 0x126   :  { %v553_v31 = vadd.f32 %v551_v19, %v537_v26  ;;  %v559_v39 = vmul.f32 %v556_v35, %v489_v23  ;;  %v598_v55 = vrot.slane %v591_v63, %v1816_v2  ;;  %v1274_v34 = vpop.eup %1273  ;;  %vm930_vm7 = vcmp.ge.f32.partialorder %v2000_v0, %v1772_v60 }
 0x127   :  { %562 = vst [vmem:[#allocation3] sm:$0xff] %v560_v59  ;;  %1283 = vpow2.f32 %v1233_v37  ;;  %vm931_vm6 = vcmp.ge.f32.partialorder %v2001_v46, %v1777_v11  ;;  %vm932_vm5 = vcmp.ge.f32.partialorder %v2002_v49, %v1772_v60  ;;  %v479_v33 = vrot.slane %v1274_v34, %v1780_v27 }
 0x128   :  { %v1835_v47 = vpop.eup %1275  ;;  %v561_v54 = vadd.f32 %v559_v39, %v553_v31  ;;  %v605_v6 = vrot.slane %v598_v55, %v1816_v2  ;;  %v483_v8 = vrot.slane %v1274_v34, %v1783_v52  ;;  %vm933_vm4 = vcmp.ge.f32.partialorder %v2003_v50, %v1777_v11 }
 0x129   :  { %v946_v19 = vsel %vm926_vm15, %v1643_v13, 80  ;;  %v947_v56 = vsel %vm927_vm3, %v1643_v13, 80  ;;  %v948_v40 = vsel %vm928_vm2, %v1646_v44, 80  ;;  %v949_v18 = vsel %vm929_vm8, %v1646_v44, 80 }
 0x12a   :  { %v1846_v43 = vpop.eup %1277  ;;  %563 = vst [vmem:[#allocation3 + $0x8] sm:$0xff] %v561_v54  ;;  %608 = vst.msk [vmem:[#allocation3 + $0x21] ss:$8 sm:$0x3] %vm1838_vm9, %v605_v6  ;;  %v950_v51 = vsel %vm930_vm7, %v1649_v30, 80  ;;  %v1079_v12 = vrot.slane %v1835_v47, %v1780_v27  ;;  %v1093_v3 = vrot.slane %v1835_v47, %v1783_v52  ;;  %v951_v41 = vsel %vm931_vm6, %v1649_v30, 80 }
 0x12b   :  { %v952_v26 = vsel %vm932_vm5, %v1652_v32, 80  ;;  %v1083_v35 = vrot.slane %v1846_v43, %v1780_v27  ;;  %v1097_v53 = vrot.slane %v1846_v43, %v1783_v52  ;;  %v953_v44 = vsel %vm933_vm4, %v1652_v32, 80 }
 0x12c   :  { %v954_v23 = vsel %vm934_vm10, %v1655_v58, 80  ;;  %v955_v30 = vsel %vm935_vm11, %v1655_v58, 80  ;;  %v956_v63 = vsel %vm936_vm12, %v1658_v7, 80  ;;  %v957_v32 = vsel %vm937_vm13, %v1658_v7, 80 }
 0x12d   :  { %v958_v10 = vsel %vm938_vm14, %v1661_v36, 80  ;;  %v959_v14 = vsel %vm939_vm0, %v1661_v36, 80  ;;  %v960_v17 = vsel %vm940_vm1, %v1666_v9, 80  ;;  %vm2004_vm10 = vcmp.ge.f32.partialorder %v1573_v5, %v1777_v11 }
 0x12e   :  { %v1280_v13 = vpop.eup %1279  ;;  %v961_v21 = vsel %vm2004_vm10, %v1666_v9, 80  ;;  %vm2005_vm11 = vcmp.ge.f32.partialorder %v1590_v16, %v1772_v60  ;;  %vm2006_vm12 = vcmp.ge.f32.partialorder %v1604_v24, %v1777_v11  ;;  %vm2007_vm13 = vcmp.ge.f32.partialorder %v1619_v1, %v1772_v60 }
 0x12f   :  { %v486_v48 = vmul.f32 %v1280_v13, %v479_v33  ;;  %v962_v25 = vsel %vm2005_vm11, %v1671_v57, 80  ;;  %v963_v45 = vsel %vm2006_vm12, %v1671_v57, 80  ;;  %v964_v62 = vsel %vm2007_vm13, %v1674_v15, 80 }
 0x130   :  { %vm2008_vm14 = vcmp.ge.f32.partialorder %v1630_v38, %v1777_v11  ;;  %vm966_vm0 = vcmp.lt.s32.totalorder %v946_v19, %v950_v51  ;;  %vm968_vm1 = vcmp.lt.s32.totalorder %v948_v40, %v952_v26  ;;  %vm993_vm4 = vcmp.lt.s32.totalorder %v947_v56, %v951_v41 }
 0x131   :  { %v1282_v31 = vpop.eup %1281  ;;  %v965_v5 = vsel %vm2008_vm14, %v1674_v15, 80  ;;  %v967_v7 = vsel %vm966_vm0, %v946_v19, %v950_v51  ;;  %v969_v36 = vsel %vm968_vm1, %v948_v40, %v952_v26  ;;  %v994_v9 = vsel %vm993_vm4, %v947_v56, %v951_v41 }
 0x132   :  { %v487_v58 = vmul.f32 %v1282_v31, %v483_v8  ;;  %vm970_vm5 = vcmp.lt.s32.totalorder %v967_v7, %v954_v23  ;;  %vm972_vm6 = vcmp.lt.s32.totalorder %v969_v36, %v956_v63  ;;  %vm995_vm7 = vcmp.lt.s32.totalorder %v949_v18, %v953_v44 }
 0x133   :  { %vm997_vm8 = vcmp.lt.s32.totalorder %v994_v9, %v955_v30  ;;  %v971_v24 = vsel %vm970_vm5, %v967_v7, %v954_v23  ;;  %v973_v1 = vsel %vm972_vm6, %v969_v36, %v956_v63  ;;  %v996_v37 = vsel %vm995_vm7, %v949_v18, %v953_v44 }
 0x134   :  { %v566_v16 = vcombine.low %v486_v48, %v487_v58  ;;  %vm974_vm15 = vcmp.lt.s32.totalorder %v971_v24, %v958_v10  ;;  %vm976_vm2 = vcmp.lt.s32.totalorder %v973_v1, %v960_v17  ;;  %v998_v38 = vsel %vm997_vm8, %v994_v9, %v955_v30  ;;  %v1284_v15 = vpop.eup %1283  ;;  %v2009_v30 = vld [vmem:[#allocation11_spill] sm:$0xff] }
 0x135   :  { %vm999_vm3 = vcmp.lt.s32.totalorder %v996_v37, %v957_v32  ;;  %v975_v59 = vsel %vm974_vm15, %v971_v24, %v958_v10  ;;  %v977_v55 = vsel %vm976_vm2, %v973_v1, %v960_v17  ;;  %vm1001_vm12 = vcmp.lt.s32.totalorder %v998_v38, %v959_v14 }
 0x136   :  { %v573_v57 = vrot.slane %v566_v16, %v1816_v2  ;;  %v1000_v34 = vsel %vm999_vm3, %v996_v37, %v957_v32  ;;  %vm978_vm10 = vcmp.lt.s32.totalorder %v975_v59, %v962_v25  ;;  %vm980_vm11 = vcmp.lt.s32.totalorder %v977_v55, %v964_v62  ;;  %v1120_v32 = vpop.permute.xlu0 %1119 }
 0x137   :  { %vm1003_vm13 = vcmp.lt.s32.totalorder %v1000_v34, %v961_v21  ;;  %v979_v29 = vsel %vm978_vm10, %v975_v59, %v962_v25  ;;  %v981_v54 = vsel %vm980_vm11, %v977_v55, %v964_v62  ;;  %v1002_v6 = vsel %vm1001_vm12, %v998_v38, %v959_v14  ;;  %v1136_v62 = vpop.permute.xlu1 %1135 }
 0x138   :  { %v580_v39 = vrot.slane %v573_v57, %v1816_v2  ;;  %v1004_v22 = vsel %vm1003_vm13, %v1000_v34, %v961_v21  ;;  %vm982_vm14 = vcmp.lt.s32.totalorder %v979_v29, %v981_v54  ;;  %vm1005_vm0 = vcmp.lt.s32.totalorder %v1002_v6, %v963_v45 }
 0x139   :  { %vm1007_vm1 = vcmp.lt.s32.totalorder %v1004_v22, %v965_v5  ;;  %v1234_v0 = vmul.f32 -1.442695, %v1772_v60  ;;  %v983_v46 = vsel %vm982_vm14, %v979_v29, %v981_v54  ;;  %v1006_v49 = vsel %vm1005_vm0, %v1002_v6, %v963_v45 }
 0x13a   :  { %587 = vst.msk [vmem:[#allocation3 + $0x20] ss:$8 sm:$0x3] %vm1838_vm9, %v580_v39  ;;  %v1008_v33 = vsel %vm1007_vm1, %v1004_v22, %v965_v5  ;;  %v1235_v8 = vmul.f32 -1.442695, %v1777_v11  ;;  %v984_v50 = vrot.slane %v983_v46, 4  ;;  %v1084_v56 = vmul.f32 %v1079_v12, %v1791_v4 }
 0x13b   :  { %vm1009_vm4 = vcmp.lt.s32.totalorder %v1006_v49, %v1008_v33  ;;  %1285 = vpow2.f32 %v1234_v0  ;;  %v1098_v60 = vmul.f32 %v1093_v3, %v1766_v20  ;;  %v1085_v11 = vmul.f32 %v1083_v35, %v1791_v4 }
 0x13c   :  { %v1010_v19 = vsel %vm1009_vm4, %v1006_v49, %v1008_v33  ;;  %1287 = vpow2.f32 %v1235_v8  ;;  %vm985_vm5 = vcmp.lt.s32.totalorder %v983_v46, %v984_v50  ;;  %v1099_v18 = vmul.f32 %v1097_v53, %v1766_v20 }
 0x13d   :  { %v1011_v40 = vrot.slane %v1010_v19, 4  ;;  %v986_v51 = vsel %vm985_vm5, %v983_v46, %v984_v50  ;;  %v1109_v12 = vrot.slane %v1835_v47, %v1786_v42  ;;  %v1113_v3 = vrot.slane %v1846_v43, %v1786_v42 }
 0x13e   :  { %v987_v41 = vrot.slane %v986_v51, 2  ;;  %v1040_v13 = vadd.f32 1.0, %v1284_v15  ;;  %v1100_v44 = vadd.f32 %v1098_v60, %v1084_v56  ;;  %v1101_v4 = vadd.f32 %v1099_v18, %v1085_v11 }
 0x13f   :  { %vm1012_vm6 = vcmp.lt.s32.totalorder %v1010_v19, %v1011_v40  ;;  %v1114_v48 = vmul.f32 %v1109_v12, %v1797_v61  ;;  %v1125_v20 = vrot.slane %v1835_v47, %v2009_v30  ;;  %v1115_v63 = vmul.f32 %v1113_v3, %v1797_v61 }
 0x140   :  { %v1013_v26 = vsel %vm1012_vm6, %v1010_v19, %v1011_v40  ;;  %vm988_vm7 = vcmp.lt.s32.totalorder %v986_v51, %v987_v41  ;;  %v1129_v42 = vrot.slane %v1846_v43, %v2009_v30  ;;  %1289 = vrcp.f32 %v1040_v13 }
 0x141   :  { %v1014_v23 = vrot.slane %v1013_v26, 2  ;;  %v989_v35 = vsel %vm988_vm7, %v986_v51, %v987_v41  ;;  %v1116_v10 = vadd.f32 %v1114_v48, %v1100_v44  ;;  %v1117_v17 = vadd.f32 %v1115_v63, %v1101_v4 }
 0x142   :  { %v990_v53 = vrot.slane %v989_v35, 1  ;;  %v1130_v58 = vmul.f32 %v1125_v20, %v1120_v32  ;;  %v1131_v47 = vmul.f32 %v1129_v42, %v1120_v32 }
 0x143   :  { %vm1015_vm8 = vcmp.lt.s32.totalorder %v1013_v26, %v1014_v23 }
 0x144   :  { %v1016_v31 = vsel %vm1015_vm8, %v1013_v26, %v1014_v23  ;;  %vm991_vm15 = vcmp.lt.s32.totalorder %v989_v35, %v990_v53  ;;  %v1132_v61 = vadd.f32 %v1130_v58, %v1116_v10  ;;  %v1133_v43 = vadd.f32 %v1131_v47, %v1117_v17 }
 0x145   :  { %v1017_v14 = vrot.slane %v1016_v31, 1  ;;  %v992_v21 = vsel %vm991_vm15, %v989_v35, %v990_v53 }
 0x146   :  { %v1020_v25 = vcvt.s32.f32 %v992_v21 }
 0x147   :  { %vm1018_vm2 = vcmp.lt.s32.totalorder %v1016_v31, %v1017_v14 }
 0x148   :  { %v1286_v45 = vpop.eup %1285  ;;  %v1019_v5 = vsel %vm1018_vm2, %v1016_v31, %v1017_v14  ;;  %v1068_v36 = vmul.f32 640.0, %v1020_v25 }
 0x149   :  { %v1288_v16 = vpop.eup %1287  ;;  %v1021_v7 = vcvt.s32.f32 %v1019_v5  ;;  %v1049_v9 = vadd.f32 1.0, %v1286_v45 }
 0x14a   :  { %v1050_v57 = vadd.f32 1.0, %v1288_v16  ;;  %v1138_v1 = vmul.f32 %v1136_v62, %v1068_v36 }
 0x14b   :  { %v1069_v24 = vmul.f32 640.0, %v1021_v7  ;;  %v1167_v37 = vcombine.low %v1020_v25, %v1021_v7  ;;  %1291 = vrcp.f32 %v1049_v9 }
 0x14c   :  { %1293 = vrcp.f32 %v1050_v57  ;;  %v1140_v15 = vadd.f32 %v1138_v1, %v1132_v61 }
 0x14d   :  { %v1139_v38 = vmul.f32 %v1136_v62, %v1069_v24  ;;  %v1174_v39 = vrot.slane %v1167_v37, %v1816_v2  ;;  %v1290_v34 = vpop.eup %1289 }
 0x14e   :  { %1142 = vst [vmem:[#allocation3 + $0x10] sm:$0xff] %v1140_v15  ;;  %v1059_v29 = vrot.slane %v1290_v34, %v1780_v27  ;;  %v1063_v54 = vrot.slane %v1290_v34, %v1783_v52 }
 0x14f   :  { %v1141_v59 = vadd.f32 %v1139_v38, %v1133_v43  ;;  %v1181_v55 = vrot.slane %v1174_v39, %v1816_v2 }
 0x151   :  { %1143 = vst [vmem:[#allocation3 + $0x18] sm:$0xff] %v1141_v59  ;;  %1184 = vst.msk [vmem:[#allocation3 + $0x31] ss:$8 sm:$0x3] %vm1838_vm9, %v1181_v55 }
 0x158   :  { %v1292_v6 = vpop.eup %1291 }
 0x159   :  { %v1294_v22 = vpop.eup %1293  ;;  %v1066_v0 = vmul.f32 %v1292_v6, %v1059_v29 }
 0x15a   :  { %v1067_v46 = vmul.f32 %v1294_v22, %v1063_v54 }
 0x15c   :  { %v1146_v49 = vcombine.low %v1066_v0, %v1067_v46 }
 0x15e   :  { %v1153_v33 = vrot.slane %v1146_v49, %v1816_v2 }
 0x160   :  { %v1160_v8 = vrot.slane %v1153_v33, %v1816_v2 }
 0x162   :  { %1163 = vst.msk [vmem:[#allocation3 + $0x30] ss:$8 sm:$0x3] %vm1838_vm9, %v1160_v8 }
 0x163   :  { %1306 = shalt.err (!%p1303_p4)
}
 0x164   :  { %s1325_s15 = smov 512   ;;  %s1326_s16 = smov 32  }
 0x165   :  { %1197 = dma.vmem_to_hbm [thread:$0]  %s1192_s2, 1024, %s1981_s4, [#allocation4], %s1325_s15, %s1325_s15, %s1326_s16  }
 0x166   :  { %1315 = dma.done.wait [#allocation4], 1024  }
 0x167   :  { %1316 = vsyncadd [#allocation4], 4294966272 }
 0x168   :  { %1201 = vsyncpa [#allocation4], 1 }

</bundles_post_ra>
